<compile_context>
chip_gen: v6e
topology: v6e:2x2x1
jax: 0.10.0
libtpu: 0.0.40
codegen_flags: <defaults>
</compile_context>

<pallas_src>
import jax
import jax.numpy as jnp
from jax.experimental import pallas as pl
from jax.experimental.pallas import tpu as pltpu


def _round_up(x, m):
    return ((x + m - 1) // m) * m


def _patch_embed_kernel(p_ref, w_ref, b_ref, o_ref):
    # p_ref: (tm, K)  patch rows, compute dtype (bf16)
    # w_ref: (K, E)   projection, compute dtype (resident: constant block index)
    # b_ref: (1, E)   bias, f32
    # o_ref: (tm, E)  output, out_dtype
    acc = jnp.dot(p_ref[...], w_ref[...], preferred_element_type=jnp.float32)
    o_ref[...] = (acc + b_ref[...]).astype(o_ref.dtype)


def prepare_patch_embed_params(weight, bias, *, compute_dtype=jnp.bfloat16):
    """One-time Conv2d-param -> kernel-layout conversion.

    Returns w_mat (K, E) in compute_dtype and b_mat (1, E) in f32.  Call once
    outside the step loop and pass via `prepared_params=` so the transpose /
    cast is not redone every call.  No padding anywhere: padding K or E would
    only add HBM bytes to a memory-bound kernel.
    """
    E, C, ph, pw = weight.shape
    K = C * ph * pw
    w = weight.reshape(E, K).T.astype(compute_dtype)  # (K, E), K in (c, kh, kw) order
    b = bias.astype(jnp.float32).reshape(1, E)
    return w, b


def _choose_m_tiling(M, tm_max):
    """Pick (tm, m_pad).

    Prefers a tm that (a) divides M exactly -> no jnp.pad of the patches and
    no out[:M] slice (each is a full extra HBM round trip), (b) is a multiple
    of 8 (sublane tile), and (c) gives an even number of grid steps when the
    step count is small, so v7x's two TensorCores both stay busy.  Falls back
    to pad+slice only when M has no usable divisor (rare: M = B*num_patches is
    normally highly composite).
    """
    limit = min(tm_max, M)
    divs = [d for d in range(8, limit + 1, 8) if M % d == 0]
    if divs:
        best = divs[-1]
        even = [d for d in divs if (M // d) % 2 == 0]
        if even and 2 * even[-1] >= best:
            best = even[-1]
        if best >= 128 or M <= 1024:
            return best, M
    tm = min(tm_max, _round_up(M, 8))
    return tm, _round_up(M, tm)


def patch_embed(x, weight, bias, patch_size, *, tm=1024,
                compute_dtype=jnp.bfloat16, out_dtype=jnp.bfloat16,
                prepared_params=None):
    """x: (B, C, H, W); weight: (embed_dim, C, ph, pw); bias: (embed_dim,).

    Returns (B, num_patches, embed_dim) in out_dtype (bf16 by default).
    """
    B, C, H, W = x.shape
    ph, pw = patch_size
    assert H % ph == 0 and W % pw == 0, "image size must be divisible by patch size"
    gh, gw = H // ph, W // pw
    num_patches = gh * gw
    embed_dim = weight.shape[0]
    K = C * ph * pw

    if prepared_params is None:
        w_mat, b_mat = prepare_patch_embed_params(weight, bias, compute_dtype=compute_dtype)
    else:
        w_mat, b_mat = prepared_params

    # --- im2col relayout: (B, C, H, W) -> (M, K), K in (c, kh, kw) order ---
    # Cast first so XLA emits a single read-f32 / write-bf16 transpose fusion;
    # allow_input_fusion below lets XLA fold this producer into the kernel's
    # input pipeline when possible.
    # TODO(synk): a fully fused variant would consume NCHW blocks directly and
    # do the (c, kh, kw) reorder in VMEM; the required sublane<->lane relayout
    # (rank-5 transpose) costs roughly as much XLU time as the HBM pass it
    # saves on v7x and is the main Mosaic-lowering risk, so the staged
    # relayout is kept as the default path.
    xc = x.astype(compute_dtype)
    patches = xc.reshape(B, C, gh, ph, gw, pw)
    patches = patches.transpose(0, 2, 4, 1, 3, 5)
    patches = patches.reshape(B * num_patches, K)

    M = B * num_patches
    tm_eff, m_pad = _choose_m_tiling(M, tm)
    if m_pad != M:
        # Rare ragged-M fallback; normally m_pad == M and nothing is copied.
        patches = jnp.pad(patches, ((0, m_pad - M), (0, 0)))

    grid = (m_pad // tm_eff,)

    cbytes = jnp.dtype(compute_dtype).itemsize
    obytes = jnp.dtype(out_dtype).itemsize

    # Right-size the VMEM limit from the real footprint (double-buffered
    # lhs/out blocks + resident weight/bias) with 2x headroom, capped well
    # under v7x's 64 MiB physical VMEM.
    vmem_need = (2 * tm_eff * K * cbytes            # patch blocks (2 buffers)
                 + 2 * K * embed_dim * cbytes       # weight
                 + 2 * embed_dim * 4                # bias
                 + 2 * tm_eff * embed_dim * obytes)  # output blocks
    vmem_limit = int(min(48 << 20, max(32 << 20, 2 * vmem_need)))

    cost = pl.CostEstimate(
        flops=2 * m_pad * K * embed_dim,
        transcendentals=0,
        bytes_accessed=(m_pad * K * cbytes + K * embed_dim * cbytes
                        + embed_dim * 4 + m_pad * embed_dim * obytes),
    )

    out = pl.pallas_call(
        _patch_embed_kernel,
        out_shape=jax.ShapeDtypeStruct((m_pad, embed_dim), out_dtype),
        grid_spec=pltpu.PrefetchScalarGridSpec(
            num_scalar_prefetch=0,
            grid=grid,
            in_specs=[
                pl.BlockSpec((tm_eff, K), lambda i: (i, 0)),
                # Constant block index -> Mosaic keeps weight/bias resident in
                # VMEM across grid steps (no per-step re-DMA).
                pl.BlockSpec((K, embed_dim), lambda i: (0, 0)),
                pl.BlockSpec((1, embed_dim), lambda i: (0, 0)),
            ],
            out_specs=pl.BlockSpec((tm_eff, embed_dim), lambda i: (i, 0)),
        ),
        compiler_params=pltpu.CompilerParams(
            dimension_semantics=("parallel",),
            vmem_limit_bytes=vmem_limit,
            allow_input_fusion=[True, False, False],
        ),
        cost_estimate=cost,
    )(patches, w_mat, b_mat)

    if m_pad != M:
        out = out[:M]
    return out.reshape(B, num_patches, embed_dim)


def patch_embed_ref(x, weight, bias, patch_size):
    """Pure-JAX f32 reference == PyTorch Conv2d(stride=kernel)+flatten+transpose."""
    B, C, H, W = x.shape
    ph, pw = patch_size
    gh, gw = H // ph, W // pw
    E = weight.shape[0]
    p = x.reshape(B, C, gh, ph, gw, pw).transpose(0, 2, 4, 1, 3, 5)
    p = p.reshape(B, gh * gw, C * ph * pw)
    w = weight.reshape(E, C * ph * pw)
    return jnp.einsum("bpk,ek->bpe", p, w) + bias[None, None, :]


if __name__ == "__main__":
    # Small shapes consistent with the module: img_size=16, patch_size=2,
    # in_chans=4, embed_dim=32, batch=2 -> num_patches = 64, M = 128, K = 16.
    B, C, H, W = 2, 4, 16, 16
    patch_size = (2, 2)
    embed_dim = 32

    key = jax.random.PRNGKey(0)
    kx, kw, kb = jax.random.split(key, 3)
    x = jax.random.normal(kx, (B, C, H, W), dtype=jnp.float32)
    weight = jax.random.normal(kw, (embed_dim, C, *patch_size), dtype=jnp.float32) * 0.02
    bias = jax.random.normal(kb, (embed_dim,), dtype=jnp.float32) * 0.02

    # Prepare the (K, E) weight layout once (cacheable across steps).
    prepared = prepare_patch_embed_params(weight, bias)
    out = patch_embed(x, weight, bias, patch_size, prepared_params=prepared)
    out = jax.block_until_ready(out)

    ref = patch_embed_ref(x, weight, bias, patch_size)
    num_patches = (H // patch_size[0]) * (W // patch_size[1])
    assert out.shape == (B, num_patches, embed_dim)
    assert out.dtype == jnp.bfloat16
    # bf16 MXU inputs / bf16 output with f32 accumulation -> loose tolerance
    # vs the f32 reference.
    assert jnp.allclose(out.astype(jnp.float32), ref, atol=2e-2, rtol=2e-2)

    print("KERNEL_OK")
</pallas_src>

<mosaic_0001>
module attributes {stable_mosaic.version = 11 : i64} {
  func.func @_patch_embed_kernel(%arg0: i32, %arg1: memref<64x16xbf16, #tpu.memory_space<vmem>>, %arg2: memref<16x32xbf16, #tpu.memory_space<vmem>>, %arg3: memref<1x32xf32, #tpu.memory_space<vmem>>, %arg4: memref<64x32xbf16, #tpu.memory_space<vmem>>) attributes {dimension_semantics = [#tpu.dimension_semantics<parallel>], iteration_bounds = array<i64: 2>, scalar_prefetch = 0 : i64, scratch_operands = 0 : i64, tpu.core_type = #tpu.core_type<tc>, window_params = [{transform_indices = @transform_0, window_bounds = array<i64: 64, 16>}, {pipeline_mode = #tpu.pipeline_mode<synchronous>, transform_indices = @transform_1, window_bounds = array<i64: 16, 32>}, {pipeline_mode = #tpu.pipeline_mode<synchronous>, transform_indices = @transform_2, window_bounds = array<i64: 1, 32>}, {transform_indices = @transform_3, window_bounds = array<i64: 64, 32>}]} {
    %c0 = arith.constant 0 : index
    %c0_0 = arith.constant 0 : index
    %0 = vector.load %arg1[%c0, %c0_0] : memref<64x16xbf16, #tpu.memory_space<vmem>>, vector<64x16xbf16>
    %c0_1 = arith.constant 0 : index
    %c0_2 = arith.constant 0 : index
    %1 = vector.load %arg2[%c0_1, %c0_2] : memref<16x32xbf16, #tpu.memory_space<vmem>>, vector<16x32xbf16>
    %cst = arith.constant dense<0.000000e+00> : vector<64x32xf32>
    %2 = tpu.matmul %0, %1, %cst {dimension_numbers = #tpu.dot_dimension_numbers<[1], [0], [0], [1], [0, 0, 1, 1], [], []>} : vector<64x16xbf16>, vector<16x32xbf16>, vector<64x32xf32> -> vector<64x32xf32>
    %c0_3 = arith.constant 0 : index
    %c0_4 = arith.constant 0 : index
    %3 = vector.load %arg3[%c0_3, %c0_4] : memref<1x32xf32, #tpu.memory_space<vmem>>, vector<1x32xf32>
    %4 = vector.broadcast %3 : vector<1x32xf32> to vector<64x32xf32>
    %5 = arith.addf %2, %4 : vector<64x32xf32>
    %6 = arith.truncf %5 : vector<64x32xf32> to vector<64x32xbf16>
    %c0_5 = arith.constant 0 : index
    %c0_6 = arith.constant 0 : index
    %7 = vector.load %arg4[%c0_5, %c0_6] : memref<64x32xbf16, #tpu.memory_space<vmem>>, vector<64x32xbf16>
    tpu.vector_store %arg4[%c0_5, %c0_6], %6 {strides = array<i32>} : memref<64x32xbf16, #tpu.memory_space<vmem>>, vector<64x32xbf16>,
    return
  }
  func.func @transform_0(%arg0: i32) -> (i32, i32) {
    %c0_i32 = arith.constant 0 : i32
    %c0_i32_0 = arith.constant 0 : i32
    return %arg0, %c0_i32 : i32, i32
  }
  func.func @transform_1(%arg0: i32) -> (i32, i32) {
    %c0_i32 = arith.constant 0 : i32
    %c0_i32_0 = arith.constant 0 : i32
    %c0_i32_1 = arith.constant 0 : i32
    return %c0_i32, %c0_i32_0 : i32, i32
  }
  func.func @transform_2(%arg0: i32) -> (i32, i32) {
    %c0_i32 = arith.constant 0 : i32
    %c0_i32_0 = arith.constant 0 : i32
    %c0_i32_1 = arith.constant 0 : i32
    return %c0_i32, %c0_i32_0 : i32, i32
  }
  func.func @transform_3(%arg0: i32) -> (i32, i32) {
    %c0_i32 = arith.constant 0 : i32
    %c0_i32_0 = arith.constant 0 : i32
    return %arg0, %c0_i32 : i32, i32
  }
}

</mosaic_0001>

<bundles_post_ra>
// kernel: tpu_custom_call.1
= control target key start
LH: loop header
LB: loop body
LE: loop exit
PB: predicated region body
PF: predicated region fallthrough
CT: control target
= control target key end

     0   :  { %s488_s12 = smov 0   ;;  %s519_s0 = inlined_call_operand.vmem [shape: bf16[128,16], index: 0, kind: input, shape index: {}]   ;;  %s520_s1 = inlined_call_operand.vmem [shape: bf16[16,32], index: 1, kind: input, shape index: {}]   ;;  %s521_s2 = inlined_call_operand.vmem [shape: f32[1,32], index: 2, kind: input, shape index: {}]   ;;  %s522_s3 = inlined_call_operand.vmem [shape: bf16[128,32], index: 3, kind: output, shape index: {}]  }
   0x1 LB: > { %s393_s13 = sadd.s32 4294967295, %s466_s12   ;;  %p397_p0 = scmp.ge.s32.totalorder %s466_s12, 1  ;;  %s466_s12 = sphi %s488_s12, %s13_s12  }
   0x2   : > { %p138_p1 = scmp.lt.s32.totalorder %s466_s12, 3 }
   0x4   : > { %p139_p2 = pnand %p397_p0, %p138_p1 }
   0x5   : > { %s398_s16 = sshll.u32 (!%p139_p2), %s393_s13, 3 }
   0x6   : > { %142 = sbr.rel (%p139_p2) target bundleno = 220 (0xdc), region = 32  ;;  %p163_p3 = scmp.lt.s32.totalorder (!%p139_p2), %s398_s16, 15 }
   0xb   : > { %v455_v0 = vld [vmem:[%s520_s1] sm:$0xff]   ;;  %s524_s16 = smov (!%p163_p3, %s398_s16), 15  ;;  %vm218_vm0 = vcmask 130048   ;;  %vm328_vm1 = vcmask 257024  }
   0xc   : > { %435 = vmatprep.subr.bf16.mxu0 %v455_v0  ;;  %445 = vmatprep.subr.bf16.mxu1 %v455_v0  ;;  %s399_s17 = sshll.u32 %s524_s16, 2  ;;  %v402_v5 = vld [vmem:[%s521_s2] ss:$0 sm:$0xff] }
   0xd   : > { %436 = vmatpush3.bf16.msra.mxu0 %v455_v0  ;;  %446 = vmatpush3.bf16.msra.mxu1 %v455_v0  ;;  %s166_s20 = scalar_lea.vmem %s519_s0, %s399_s17  ;;  %s172_s25 = scalar_lea.vmem %s522_s3, %s399_s17 }
   0xe   : > { %v456_v1 = vld [vmem:[%s166_s20] sm:$0xff]   ;;  %v457_v2 = vld [vmem:[%s166_s20 + $0x10] sm:$0xff]   ;;  %v458_v3 = vld [vmem:[%s166_s20 + $0x8] sm:$0xff]  }
   0xf   : > { %437 = vmatprep.mubr.msk.bf16.mxu0 %vm218_vm0, %v456_v1  ;;  %441 = vmatprep.mubr.msk.bf16.mxu1 %vm218_vm0, %v457_v2  ;;  %v459_v4 = vld [vmem:[%s166_s20 + $0x18] sm:$0xff]  }
  0x10   : > { %438 = vmatmul.mubr.msk.bf16.vlgmr.msra.gmra.mxu0 %vm218_vm0, %v458_v3  ;;  %442 = vmatmul.mubr.msk.bf16.vlgmr.msra.gmra.mxu1 %vm218_vm0, %v459_v4 }
  0xd0   : > { %v439_v6 = vpop.f32.mrf.mxu0  ;;  %v443_v8 = vpop.f32.mrf.mxu1 }
  0xd1   : > { %v274_v7 = vadd.f32 %v439_v6, %v402_v5  ;;  %v290_v9 = vadd.f32 %v443_v8, %v402_v5 }
  0xd2   : > { %v265_v10 = vpop.f32.mrf.mxu0  ;;  %v281_v13 = vpop.f32.mrf.mxu1 }
  0xd3   : > { %v424_v11 = vpack.c.bf16 %v274_v7, %v274_v7  ;;  %v266_v12 = vadd.f32 %v402_v5, %v265_v10  ;;  %v428_v14 = vpack.c.bf16 %v290_v9, %v290_v9  ;;  %v282_v15 = vadd.f32 %v402_v5, %v281_v13 }
  0xd4   : > { %v440_v16 = vpop.f32.mrf.mxu0  ;;  %v444_v19 = vpop.f32.mrf.mxu1 }
  0xd5   : > { %331 = vst.msk [vmem:[%s172_s25 + $0x8] sm:$0xf] %vm328_vm1, %v424_v11  ;;  %v422_v17 = vpack.c.bf16 %v266_v12, %v266_v12  ;;  %v277_v18 = vadd.f32 %v440_v16, %v402_v5  ;;  %335 = vst.msk [vmem:[%s172_s25 + $0x18] sm:$0xf] %vm328_vm1, %v428_v14  ;;  %v426_v20 = vpack.c.bf16 %v282_v15, %v282_v15 }
  0xd6   : > { %v293_v21 = vadd.f32 %v444_v19, %v402_v5  ;;  %v268_v22 = vpop.f32.mrf.mxu0  ;;  %v284_v25 = vpop.f32.mrf.mxu1 }
  0xd7   : > { %329 = vst.msk [vmem:[%s172_s25] sm:$0xf] %vm328_vm1, %v422_v17  ;;  %v425_v23 = vpack.c.bf16 %v277_v18, %v277_v18  ;;  %v269_v24 = vadd.f32 %v402_v5, %v268_v22  ;;  %333 = vst.msk [vmem:[%s172_s25 + $0x10] sm:$0xf] %vm328_vm1, %v426_v20  ;;  %v285_v27 = vadd.f32 %v402_v5, %v284_v25 }
  0xd8   : > { %v429_v26 = vpack.c.bf16 %v293_v21, %v293_v21 }
  0xd9   : > { %332 = vst.msk [vmem:[%s172_s25 + $0xc] sm:$0xf] %vm328_vm1, %v425_v23  ;;  %v423_v28 = vpack.c.bf16 %v269_v24, %v269_v24  ;;  %v427_v29 = vpack.c.bf16 %v285_v27, %v285_v27 }
  0xda   : > { %336 = vst.msk [vmem:[%s172_s25 + $0x1c] sm:$0xf] %vm328_vm1, %v429_v26 }
  0xdb   : > { %330 = vst.msk [vmem:[%s172_s25 + $0x4] sm:$0xf] %vm328_vm1, %v423_v28  ;;  %334 = vst.msk [vmem:[%s172_s25 + $0x14] sm:$0xf] %vm328_vm1, %v427_v29 }
  0xdc PF: > { %s13_s12 = sadd.s32 1, %s466_s12  }
  0xdd   : > { %p10_p4 = scmp.ge.s32.totalorder %s13_s12, 4  }
  0xdf   :  { %12 = sbr.rel (!%p10_p4) target bundleno = 1 (0x1), region = 62 }

</bundles_post_ra>
